<compile_context>
chip_gen: v6e
topology: v6e:2x2x1
jax: 0.10.0
libtpu: 0.0.40
codegen_flags: <defaults>
</compile_context>

<pallas_src>
import functools

import jax
import jax.numpy as jnp
from jax.experimental import pallas as pl
from jax.experimental.pallas import tpu as pltpu


def _chunk_bounds(topic_size: int, max_chunks: int = 4, row_align: int = 8):
    """Split the topic axis into <= max_chunks contiguous (start, size) slabs.

    Chunk starts are aligned to `row_align` rows (sublane pack for f32) where
    possible; the last chunk absorbs any ragged remainder. Tables that are
    small relative to the chunking granularity get a single descriptor.
    """
    if topic_size <= row_align * max_chunks:
        return ((0, topic_size),)
    n = max_chunks
    base = topic_size // n
    base = max(row_align, (base // row_align) * row_align)
    bounds = []
    start = 0
    for _ in range(n - 1):
        size = min(base, topic_size - start)
        if size <= 0:
            break
        bounds.append((start, size))
        start += size
    if start < topic_size:
        bounds.append((start, topic_size - start))
    return tuple(bounds)


def _copy_kernel(bounds, rho_hbm, out_hbm, sems):
    # Direct HBM -> HBM DMA copy of the whole table, issued as a few large
    # concurrent descriptors (one semaphore each), then waited on.
    copies = [
        pltpu.make_async_copy(
            rho_hbm.at[pl.ds(start, size), :],
            out_hbm.at[pl.ds(start, size), :],
            sems.at[i],
        )
        for i, (start, size) in enumerate(bounds)
    ]
    for cp in copies:
        cp.start()
    for cp in copies:
        cp.wait()


def get_topic_embedding(rho: jax.Array, *, force_materialize: bool = False) -> jax.Array:
    """Forward pass of Get_topic_embedding: returns the topic embedding table.

    Default path is the zero-cost identity (`return rho`), matching the module
    semantics exactly. Set force_materialize=True to produce a fresh HBM copy
    via a direct HBM->HBM DMA Pallas kernel.
    """
    if not force_materialize:
        return rho

    topic_size, emb_size = rho.shape
    bounds = _chunk_bounds(topic_size)
    kernel = functools.partial(_copy_kernel, bounds)
    return pl.pallas_call(
        kernel,
        out_shape=jax.ShapeDtypeStruct((topic_size, emb_size), rho.dtype),
        # Raw HBM refs on both sides: no VMEM staging, no grid, no tiling.
        in_specs=[pl.BlockSpec(memory_space=pl.ANY)],
        out_specs=pl.BlockSpec(memory_space=pl.ANY),
        scratch_shapes=[pltpu.SemaphoreType.DMA((len(bounds),))],
    )(rho)


def init_rho(key, topic_size: int, emb_size: int, dtype=jnp.float32) -> jax.Array:
    # Matches nn.init.normal_(w1, std=0.02)
    return (0.02 * jax.random.normal(key, (topic_size, emb_size))).astype(dtype)


if __name__ == "__main__":
    topic_size = 32   # number of topics (small demo shape)
    emb_size = 256    # embedding dimension (multiple of 128 -> lane-aligned)

    key = jax.random.PRNGKey(0)
    rho = init_rho(key, topic_size, emb_size)

    # Default (zero-cost) path: forward() is the identity on the parameter.
    out_fast = jax.block_until_ready(get_topic_embedding(rho))

    # Explicit materialization path: exercises the Pallas HBM->HBM DMA kernel.
    out_copy = jax.block_until_ready(get_topic_embedding(rho, force_materialize=True))

    assert out_fast.shape == (topic_size, emb_size)
    assert out_copy.shape == (topic_size, emb_size)
    assert out_copy.dtype == rho.dtype
    assert jnp.array_equal(out_fast, rho)
    assert jnp.array_equal(out_copy, rho)

    print("KERNEL_OK")
</pallas_src>

<mosaic_0001>
module attributes {stable_mosaic.version = 11 : i64} {
  func.func @_copy_kernel(%arg0: memref<32x256xf32, #tpu.memory_space<any>>, %arg1: memref<32x256xf32, #tpu.memory_space<any>>, %arg2: memref<1x!tpu.dma_semaphore, #tpu.memory_space<semaphore_mem>>) attributes {dimension_semantics = [], scalar_prefetch = 0 : i64, scratch_operands = 1 : i64, tpu.core_type = #tpu.core_type<tc>} {
    %c0_i32 = arith.constant 0 : i32
    %c0_i32_0 = arith.constant 0 : i32
    %c0_i32_1 = arith.constant 0 : i32
    %0 = tpu.memref_slice %arg0[%c0_i32_0, %c0_i32_1] : memref<32x256xf32, #tpu.memory_space<any>> -> memref<32x256xf32, #tpu.memory_space<any>>
    %c0_i32_2 = arith.constant 0 : i32
    %c0_i32_3 = arith.constant 0 : i32
    %1 = tpu.memref_slice %arg1[%c0_i32_2, %c0_i32_3] : memref<32x256xf32, #tpu.memory_space<any>> -> memref<32x256xf32, #tpu.memory_space<any>>
    %2 = tpu.memref_slice %arg2[%c0_i32] : memref<1x!tpu.dma_semaphore, #tpu.memory_space<semaphore_mem>> -> memref<1x!tpu.dma_semaphore, #tpu.memory_space<semaphore_mem>>
    %3 = tpu.memref_squeeze %2 : memref<1x!tpu.dma_semaphore, #tpu.memory_space<semaphore_mem>> -> memref<!tpu.dma_semaphore, #tpu.memory_space<semaphore_mem>>
    tpu.enqueue_dma source(%0 : memref<32x256xf32, #tpu.memory_space<any>>) target(%1 : memref<32x256xf32, #tpu.memory_space<any>>) target_semaphore(%3 : memref<!tpu.dma_semaphore, #tpu.memory_space<semaphore_mem>>)
    %c0_i32_4 = arith.constant 0 : i32
    %c0_i32_5 = arith.constant 0 : i32
    %c0_i32_6 = arith.constant 0 : i32
    %4 = tpu.memref_slice %arg0[%c0_i32_5, %c0_i32_6] : memref<32x256xf32, #tpu.memory_space<any>> -> memref<32x256xf32, #tpu.memory_space<any>>
    %c0_i32_7 = arith.constant 0 : i32
    %c0_i32_8 = arith.constant 0 : i32
    %5 = tpu.memref_slice %arg1[%c0_i32_7, %c0_i32_8] : memref<32x256xf32, #tpu.memory_space<any>> -> memref<32x256xf32, #tpu.memory_space<any>>
    %6 = tpu.memref_slice %arg2[%c0_i32_4] : memref<1x!tpu.dma_semaphore, #tpu.memory_space<semaphore_mem>> -> memref<1x!tpu.dma_semaphore, #tpu.memory_space<semaphore_mem>>
    %7 = tpu.memref_squeeze %6 : memref<1x!tpu.dma_semaphore, #tpu.memory_space<semaphore_mem>> -> memref<!tpu.dma_semaphore, #tpu.memory_space<semaphore_mem>>
    tpu.wait_dma2 semaphore(%7 : memref<!tpu.dma_semaphore, #tpu.memory_space<semaphore_mem>>) src(%4 : memref<32x256xf32, #tpu.memory_space<any>>) dst(%5 : memref<32x256xf32, #tpu.memory_space<any>>)
    return
  }
}

</mosaic_0001>

<bundles_post_ra>
// kernel: tpu_custom_call.1
= control target key start
LH: loop header
LB: loop body
LE: loop exit
PB: predicated region body
PF: predicated region fallthrough
CT: control target
= control target key end

     0   :  { %s29_s6 = smov [#allocation2]   ;;  %s30_s7 = smov 131072   ;;  %s48_s0 = inlined_call_operand.hbm [shape: f32[32,256], index: 0, kind: input, shape index: {}]   ;;  %s49_s1 = inlined_call_operand.hbm [shape: f32[32,256], index: 1, kind: output, shape index: {}]  }
   0x1   :  { %s31_s8 = smov 0  }
   0x2   :  { %12 = dma.general %s48_s0, 1024, %s49_s1, %s29_s6, %s30_s7, [#allocation4], %s31_s8, 0  }
   0x3   :  { %27 = dma.done.wait [#allocation2], 1024 }
   0x4   :  { %28 = vsyncadd [#allocation2], 4294966272 }
   0x5   :  { %17 = vsyncmov [#allocation2] }
   0x8   :  { %s18_s13 = vpop.sfrf %17 }
   0x9   :  { %p23_p0 = scmp.ne.s32.totalorder %s18_s13, 0 }
   0xb   :  { %22 = shalt.err (%p23_p0)  }

</bundles_post_ra>
